<compile_context>
chip_gen: v5e
topology: v5e:2x2
jax: 0.10.0
libtpu: 0.0.40
codegen_flags: <defaults>
</compile_context>

<pallas_src>
import enum
import math

import jax
import jax.numpy as jnp
from jax.experimental import pallas as pl
from jax.experimental.pallas import tpu as pltpu


class QKVProjectionOption(enum.Enum):
    INDIVIDUAL = 1
    QK = 2
    SAME = 3


# ---------------------------------------------------------------------------
# Pallas kernel: fused linear  o = x @ W + b   (bf16 MXU feed, f32 accumulate)
# ---------------------------------------------------------------------------

def _fused_proj_kernel(x_ref, w_ref, b_ref, o_ref):
    # x: (tile_m, d_in)  w: (d_in, tile_n)  b: (1, tile_n) f32  o: (tile_m, tile_n)
    x = x_ref[...].astype(w_ref.dtype)            # bf16 feed (no-op if already bf16)
    acc = jnp.dot(x, w_ref[...], preferred_element_type=jnp.float32)
    o_ref[...] = (acc + b_ref[...]).astype(o_ref.dtype)


def _round_down(v, m):
    return max(m, (int(v) // m) * m)


def _round_up(v, m):
    return ((int(v) + m - 1) // m) * m


def _vmem_caps():
    """(tile-planning budget, vmem_limit_bytes) — generation aware."""
    cap = 64 * 1024 * 1024                         # conservative default (v7x per-TC)
    try:
        cap = int(pltpu.get_tpu_info().vmem_capacity_bytes)
    except Exception:
        pass
    budget = int(cap * 0.60)                       # plan tiles against this (headroom)
    limit = int(cap * 0.85)                        # what we tell Mosaic
    return budget, limit


def fused_linear(x2d, w, b, *, max_resident_weight_bytes=None, tile_n=None):
    """x2d: (n, d_in), w: (d_in, d_out) [bf16 preferred], b: (d_out,) -> (n, d_out)."""
    n, d_in = x2d.shape
    d_out = w.shape[1]
    out_dtype = x2d.dtype
    x_bytes = x2d.dtype.itemsize
    w_bytes = w.dtype.itemsize
    o_bytes = jnp.dtype(out_dtype).itemsize

    budget, vmem_limit = _vmem_caps()
    if max_resident_weight_bytes is None:
        max_resident_weight_bytes = budget // 2

    b2d = b.reshape(1, d_out).astype(jnp.float32)  # bias added in f32

    weight_bytes = d_in * d_out * w_bytes + d_out * 4   # single-buffered (Buffered(1))

    cost = pl.CostEstimate(
        flops=int(2 * n * d_in * d_out),
        transcendentals=0,
        bytes_accessed=int(n * d_in * x_bytes + d_in * d_out * w_bytes
                           + d_out * 4 + n * d_out * o_bytes),
    )

    use_resident = (weight_bytes <= max_resident_weight_bytes) or (d_out < 256)

    if use_resident:
        # --- resident-weight path: grid over rows only ---------------------
        row_bytes = 2 * d_in * x_bytes + 2 * d_out * o_bytes    # double-buffered x/out
        avail = max(budget - weight_bytes, 16 * row_bytes)
        tile_m = _round_down(min(1024, avail // row_bytes, _round_up(n, 16)), 16)
        grid = (pl.cdiv(n, tile_m),)
        in_specs = [
            pl.BlockSpec((tile_m, d_in), lambda i: (i, 0)),                 # pipelined rows
            pl.BlockSpec((d_in, d_out), lambda i: (0, 0),
                         pipeline_mode=pl.Buffered(1)),                     # resident W
            pl.BlockSpec((1, d_out), lambda i: (0, 0),
                         pipeline_mode=pl.Buffered(1)),                     # resident b
        ]
        out_specs = pl.BlockSpec((tile_m, d_out), lambda i: (i, 0))
        dims = ("parallel",)
    else:
        # --- N-tiled fallback: weight blocks swept, resident across row sweep
        if tile_n is None:
            tile_n = 512 if d_out >= 512 else 256
            while tile_n > 128 and 2 * d_in * tile_n * w_bytes > budget // 2:
                tile_n = max(128, tile_n // 2)
        wblk_bytes = 2 * (d_in * tile_n * w_bytes + tile_n * 4)  # default double-buffer
        row_bytes = 2 * d_in * x_bytes + 2 * tile_n * o_bytes
        avail = max(budget - wblk_bytes, 16 * row_bytes)
        tile_m = _round_down(min(1024, avail // row_bytes, _round_up(n, 16)), 16)
        grid = (pl.cdiv(d_out, tile_n), pl.cdiv(n, tile_m))       # j outermost
        in_specs = [
            pl.BlockSpec((tile_m, d_in), lambda j, i: (i, 0)),
            pl.BlockSpec((d_in, tile_n), lambda j, i: (0, j)),    # constant over inner i
            pl.BlockSpec((1, tile_n), lambda j, i: (0, j)),
        ]
        out_specs = pl.BlockSpec((tile_m, tile_n), lambda j, i: (i, j))
        dims = ("parallel", "parallel")

    return pl.pallas_call(
        _fused_proj_kernel,
        out_shape=jax.ShapeDtypeStruct((n, d_out), out_dtype),
        grid=grid,
        in_specs=in_specs,
        out_specs=out_specs,
        compiler_params=pltpu.CompilerParams(
            dimension_semantics=dims,
            vmem_limit_bytes=vmem_limit,
        ),
        cost_estimate=cost,
    )(x2d, w, b2d)


# ---------------------------------------------------------------------------
# Module port
# ---------------------------------------------------------------------------

class AttentionProjectorPallas:
    """JAX/Pallas port of AttentionProjector.forward."""

    def __init__(self, d_model,
                 projection_option=QKVProjectionOption.INDIVIDUAL,
                 *, rng_key):
        self.d_model = d_model
        self.projection_option = projection_option
        D = d_model

        def init_linear(k):
            # nn.Linear default init: U(-1/sqrt(fan_in), 1/sqrt(fan_in))
            kw, kb = jax.random.split(k)
            bound = 1.0 / math.sqrt(D)
            w = jax.random.uniform(kw, (D, D), jnp.float32, -bound, bound)
            b = jax.random.uniform(kb, (D,), jnp.float32, -bound, bound)
            return w, b

        keys = jax.random.split(rng_key, 3)
        if projection_option == QKVProjectionOption.INDIVIDUAL:
            self.Wq, self.bq = init_linear(keys[0])
            self.Wv, self.bv = init_linear(keys[1])
            # k_proj exists in the reference module but forward uses v_proj for k.
            self.Wk, self.bk = init_linear(keys[2])
            W = jnp.concatenate([self.Wq, self.Wv], axis=1)       # (D, 2D)
            bb = jnp.concatenate([self.bq, self.bv], axis=0)
        elif projection_option == QKVProjectionOption.QK:
            self.Wqk, self.bqk = init_linear(keys[0])
            self.Wv, self.bv = init_linear(keys[1])
            W = jnp.concatenate([self.Wqk, self.Wv], axis=1)      # (D, 2D)
            bb = jnp.concatenate([self.bqk, self.bv], axis=0)
        else:  # SAME
            self.Wp, self.bp = init_linear(keys[0])
            W = self.Wp                                           # (D, D)
            bb = self.bp

        # bf16 weight halves HBM bytes & VMEM; bias kept f32 for f32 bias add.
        self.W_fused = W.astype(jnp.bfloat16)
        self.b_fused = bb.astype(jnp.float32)

    def __call__(self, x):
        *lead, D = x.shape
        assert D == self.d_model
        n = int(math.prod(lead)) if lead else 1
        x2d = x.reshape(n, D)

        out = fused_linear(x2d, self.W_fused, self.b_fused)

        def back(y):
            return y.reshape(*lead, D)

        if self.projection_option == QKVProjectionOption.INDIVIDUAL:
            q = back(out[:, :D])
            v = back(out[:, D:])
            k = v            # reference: k = self.v_proj(x)
        elif self.projection_option == QKVProjectionOption.QK:
            q = back(out[:, :D])
            v = back(out[:, D:])
            k = q            # reference: k = torch.clone(q)
        else:  # SAME
            q = back(out)
            v = q            # reference: v = torch.clone(q)
            k = q            # reference: k = torch.clone(q)
        return q, k, v


# ---------------------------------------------------------------------------
# Self-test
# ---------------------------------------------------------------------------

if __name__ == "__main__":
    hp = jax.lax.Precision.HIGHEST

    # ---- module-level tests (resident-weight path) ------------------------
    B, S, D = 2, 8, 32
    key = jax.random.PRNGKey(0)
    kx, kp, kbig = jax.random.split(key, 3)
    x = jax.random.normal(kx, (B, S, D), dtype=jnp.float32)
    x2d = x.reshape(-1, D)
    x2d_bf = x2d.astype(jnp.bfloat16).astype(jnp.float32)

    for opt in (QKVProjectionOption.INDIVIDUAL,
                QKVProjectionOption.QK,
                QKVProjectionOption.SAME):
        mod = AttentionProjectorPallas(D, opt, rng_key=kp)
        q, k, v = mod(x)
        q = jax.block_until_ready(q)
        k = jax.block_until_ready(k)
        v = jax.block_until_ready(v)
        assert q.shape == (B, S, D) and k.shape == (B, S, D) and v.shape == (B, S, D)

        # Tight check: kernel math vs bf16-operand reference (module's params).
        Wf = mod.W_fused.astype(jnp.float32)
        out_ref = jnp.dot(x2d_bf, Wf, precision=hp) + mod.b_fused
        d_out = Wf.shape[1]

        # Semantic (PyTorch f32) reference, loose tolerance (bf16 operands).
        if opt == QKVProjectionOption.INDIVIDUAL:
            q_f32 = jnp.dot(x2d, mod.Wq, precision=hp) + mod.bq
            v_f32 = jnp.dot(x2d, mod.Wv, precision=hp) + mod.bv
            q_t, v_t = out_ref[:, :D], out_ref[:, D:]
            pairs = ((q, q_t, q_f32), (v, v_t, v_f32), (k, v_t, v_f32))
        elif opt == QKVProjectionOption.QK:
            q_f32 = jnp.dot(x2d, mod.Wqk, precision=hp) + mod.bqk
            v_f32 = jnp.dot(x2d, mod.Wv, precision=hp) + mod.bv
            q_t, v_t = out_ref[:, :D], out_ref[:, D:]
            pairs = ((q, q_t, q_f32), (v, v_t, v_f32), (k, q_t, q_f32))
        else:
            q_f32 = jnp.dot(x2d, mod.Wp, precision=hp) + mod.bp
            q_t = out_ref
            pairs = ((q, q_t, q_f32), (v, q_t, q_f32), (k, q_t, q_f32))

        for got, tight_ref, loose_ref in pairs:
            g = got.reshape(-1, D)
            assert bool(jnp.all(jnp.isfinite(g)))
            assert jnp.allclose(g, tight_ref, atol=1e-3, rtol=1e-3)
            assert jnp.allclose(g, loose_ref, atol=5e-2, rtol=5e-2)

    # ---- forced N-tiled fallback path smoke test ---------------------------
    D2 = 256
    k1, k2, k3 = jax.random.split(kbig, 3)
    x2 = jax.random.normal(k1, (16, D2), dtype=jnp.float32)
    w2 = jax.random.uniform(k2, (D2, 2 * D2), jnp.float32, -0.0625, 0.0625).astype(jnp.bfloat16)
    b2 = jax.random.uniform(k3, (2 * D2,), jnp.float32, -0.0625, 0.0625)
    out2 = fused_linear(x2, w2, b2, max_resident_weight_bytes=0, tile_n=256)
    out2 = jax.block_until_ready(out2)
    ref2 = jnp.dot(x2.astype(jnp.bfloat16).astype(jnp.float32),
                   w2.astype(jnp.float32), precision=hp) + b2
    assert out2.shape == (16, 2 * D2)
    assert bool(jnp.all(jnp.isfinite(out2)))
    assert jnp.allclose(out2, ref2, atol=2e-3, rtol=2e-3)

    print("KERNEL_OK")
</pallas_src>

<mosaic_0001>
module attributes {stable_mosaic.version = 11 : i64} {
  func.func @_fused_proj_kernel(%arg0: i32, %arg1: memref<16x32xf32, #tpu.memory_space<vmem>>, %arg2: memref<32x64xbf16, #tpu.memory_space<vmem>>, %arg3: memref<1x64xf32, #tpu.memory_space<vmem>>, %arg4: memref<16x64xf32, #tpu.memory_space<vmem>>) attributes {dimension_semantics = [#tpu.dimension_semantics<parallel>], iteration_bounds = array<i64: 1>, scalar_prefetch = 0 : i64, scratch_operands = 0 : i64, tpu.core_type = #tpu.core_type<tc>, window_params = [{transform_indices = @transform_0, window_bounds = array<i64: 16, 32>}, {pipeline_mode = #tpu.pipeline_mode<synchronous>, transform_indices = @transform_1, window_bounds = array<i64: 32, 64>}, {pipeline_mode = #tpu.pipeline_mode<synchronous>, transform_indices = @transform_2, window_bounds = array<i64: 1, 64>}, {transform_indices = @transform_3, window_bounds = array<i64: 16, 64>}]} {
    %c0 = arith.constant 0 : index
    %c0_0 = arith.constant 0 : index
    %0 = vector.load %arg1[%c0, %c0_0] : memref<16x32xf32, #tpu.memory_space<vmem>>, vector<16x32xf32>
    %1 = arith.truncf %0 : vector<16x32xf32> to vector<16x32xbf16>
    %c0_1 = arith.constant 0 : index
    %c0_2 = arith.constant 0 : index
    %2 = vector.load %arg2[%c0_1, %c0_2] : memref<32x64xbf16, #tpu.memory_space<vmem>>, vector<32x64xbf16>
    %cst = arith.constant dense<0.000000e+00> : vector<16x64xf32>
    %3 = tpu.matmul %1, %2, %cst {dimension_numbers = #tpu.dot_dimension_numbers<[1], [0], [0], [1], [0, 0, 1, 1], [], []>} : vector<16x32xbf16>, vector<32x64xbf16>, vector<16x64xf32> -> vector<16x64xf32>
    %c0_3 = arith.constant 0 : index
    %c0_4 = arith.constant 0 : index
    %4 = vector.load %arg3[%c0_3, %c0_4] : memref<1x64xf32, #tpu.memory_space<vmem>>, vector<1x64xf32>
    %5 = vector.broadcast %4 : vector<1x64xf32> to vector<16x64xf32>
    %6 = arith.addf %3, %5 : vector<16x64xf32>
    %c0_5 = arith.constant 0 : index
    %c0_6 = arith.constant 0 : index
    %7 = vector.load %arg4[%c0_5, %c0_6] : memref<16x64xf32, #tpu.memory_space<vmem>>, vector<16x64xf32>
    tpu.vector_store %arg4[%c0_5, %c0_6], %6 {strides = array<i32>} : memref<16x64xf32, #tpu.memory_space<vmem>>, vector<16x64xf32>,
    return
  }
  func.func @transform_0(%arg0: i32) -> (i32, i32) {
    %c0_i32 = arith.constant 0 : i32
    %c0_i32_0 = arith.constant 0 : i32
    return %arg0, %c0_i32 : i32, i32
  }
  func.func @transform_1(%arg0: i32) -> (i32, i32) {
    %c0_i32 = arith.constant 0 : i32
    %c0_i32_0 = arith.constant 0 : i32
    %c0_i32_1 = arith.constant 0 : i32
    return %c0_i32, %c0_i32_0 : i32, i32
  }
  func.func @transform_2(%arg0: i32) -> (i32, i32) {
    %c0_i32 = arith.constant 0 : i32
    %c0_i32_0 = arith.constant 0 : i32
    %c0_i32_1 = arith.constant 0 : i32
    return %c0_i32, %c0_i32_0 : i32, i32
  }
  func.func @transform_3(%arg0: i32) -> (i32, i32) {
    %c0_i32 = arith.constant 0 : i32
    %c0_i32_0 = arith.constant 0 : i32
    return %arg0, %c0_i32 : i32, i32
  }
}

</mosaic_0001>

<bundles_post_ra>
// kernel: tpu_custom_call.1
= control target key start
LH: loop header
LB: loop body
LE: loop exit
PB: predicated region body
PF: predicated region fallthrough
CT: control target
= control target key end

     0   :  { %8 = vsyncpa [#allocation3], 0  ;;  %s254_s0 = inlined_call_operand.hbm [shape: f32[16,32], index: 0, kind: input, shape index: {}]   ;;  %s255_s1 = inlined_call_operand.hbm [shape: bf16[32,64], index: 1, kind: input, shape index: {}]   ;;  %s256_s2 = inlined_call_operand.vmem [shape: f32[1,64], index: 2, kind: input, shape index: {}]   ;;  %s257_s3 = inlined_call_operand.hbm [shape: f32[16,64], index: 3, kind: output, shape index: {}]  }
   0x1   :  { %9 = vsyncpa [#allocation6], 0 }
   0x2   :  { %10 = vsyncpa [#allocation4], 0  ;;  %s15_s14 = sshll.u32 %s254_s0, 4  ;;  %s209_s15 = smov [#allocation2]   ;;  %s16_s14 = int_to_ptr.hbm [resolvable:$true] %s15_s14 }
   0x3   :  { %s17_s16 = sshll.u32 %s209_s15, 4  ;;  %s28_s19 = sshll.u32 %s255_s1, 4  ;;  %s18_s16 = int_to_ptr.vmem [resolvable:$true] %s17_s16  ;;  %s29_s19 = int_to_ptr.hbm [resolvable:$true] %s28_s19 }
   0x4   :  { %s210_s20 = smov 128   ;;  %s211_s21 = smov 8  }
   0x5   :  { %23 = dma.hbm_to_vmem [thread:$0]  %s16_s14, 256, %s18_s16, [#allocation3], %s210_s20, %s210_s20, %s211_s21  }
   0x6   :  { %s212_s22 = smov [#allocation5]   ;;  %s213_s24 = smov 64  }
   0x7   :  { %s30_s23 = sshll.u32 %s212_s22, 4  ;;  %s214_s0 = smov 4   ;;  %s31_s23 = int_to_ptr.vmem [resolvable:$true] %s30_s23 }
   0x8   :  { %36 = dma.hbm_to_vmem [thread:$0]  %s29_s19, 256, %s31_s23, [#allocation6], %s213_s24, %s213_s24, %s214_s0  }
   0x9   :  { %203 = dma.done.wait [#allocation3], 256  }
   0xa   :  { %204 = vsyncadd [#allocation3], 4294967040 }
   0xb   :  { %205 = dma.done.wait [#allocation6], 256  }
   0xc   :  { %206 = vsyncadd [#allocation6], 4294967040  ;;  %v122_v0 = vld [vmem:[#allocation5 + $0x8] sm:$0xff]  ;;  %v121_v1 = vld [vmem:[#allocation5] sm:$0xff]  ;;  %vm71_vm0 = vcmask 261120   ;;  %vm89_vm1 = vcmask 523264  }
   0xd   :  { %81 = vmatpush.bf16.msra.mxu0 %v122_v0  ;;  %v48_v2 = vld [vmem:[#allocation2] sm:$0xff]  ;;  %v49_v3 = vld [vmem:[#allocation2 + $0x8] sm:$0xff]  ;;  %s215_s26 = smov [#allocation7]   ;;  %s98_s30 = sshll.u32 %s257_s3, 4  ;;  %s99_s30 = int_to_ptr.hbm [resolvable:$true] %s98_s30 }
   0xe   :  { %v50_v4 = vpack.c.bf16 %v49_v3, %v48_v2  ;;  %v130_v5 = vld [vmem:[%s256_s2] ss:$0 sm:$0xff]  ;;  %s96_s27 = sshll.u32 %s215_s26, 4  ;;  %s97_s27 = int_to_ptr.vmem [resolvable:$true] %s96_s27 }
  0x11   :  { %82 = vmatpush.bf16.msra.mxu0 %v121_v1 }
  0x14   :  { %120 = vmatmul.msk.bf16.vlgmr.msra.gmra.mxu0 %vm71_vm0, %v50_v4 }
  0x91   :  { %v84_v6 = vpop.f32.mrf.mxu0 }
  0x92   :  { %v85_v7 = vadd.f32 %v130_v5, %v84_v6 }
  0x94   :  { %90 = vst.msk [vmem:[#allocation7] sm:$0xff] %vm89_vm1, %v85_v7 }
  0x99   :  { %v86_v8 = vpop.f32.mrf.mxu0 }
  0x9a   :  { %v87_v9 = vadd.f32 %v130_v5, %v86_v8 }
  0x9c   :  { %91 = vst.msk [vmem:[#allocation7 + $0x8] sm:$0xff] %vm89_vm1, %v87_v9 }
  0x9d   :  { %104 = dma.vmem_to_hbm [thread:$0]  %s97_s27, 256, %s99_s30, [#allocation4], %s210_s20, %s210_s20, %s211_s21  }
  0x9e   :  { %207 = dma.done.wait [#allocation4], 256  }
  0x9f   :  { %208 = vsyncadd [#allocation4], 4294967040 }
  0xa0   :  { %109 = vsyncpa [#allocation3], 1 }
  0xa1   :  { %110 = vsyncpa [#allocation6], 1 }
  0xa2   :  { %111 = vsyncpa [#allocation4], 1 }

</bundles_post_ra>
